<compile_context>
chip_gen: v7x
topology: tpu7x:2x2x1
jax: 0.10.0
libtpu: 0.0.40
codegen_flags: <defaults>
</compile_context>

<pallas_src>
import jax
import jax.numpy as jnp
from jax.experimental import pallas as pl
from jax.experimental.pallas import tpu as pltpu

IN_FEATURES = 10
OUT_FEATURES = 1
GROUP = 128                       # samples packed per grouped row (lane axis)
LANES = GROUP * IN_FEATURES       # 1280 = 10 full 128-lane vregs per row
ROW_ALIGN = 8                     # sublane alignment of the grouped-row axis


def _round_up(n, m):
    return ((n + m - 1) // m) * m


def linear_kernel(b_ref, x_ref, w_hi_ref, w_lo_ref, o_ref):
    # b_ref   : SMEM (1,)          f32  -- bias (scalar prefetch)
    # x_ref   : VMEM (tbg, 1280)   f32  -- 128 samples per row, lane-dense
    # w_hi_ref: VMEM (1280, 128)   bf16 -- block-diagonal "gather" weights (hi)
    # w_lo_ref: VMEM (1280, 128)   bf16 -- residual weights (lo)
    # o_ref   : VMEM (tbg, 128)    f32  -- lane-dense outputs, unmasked stores
    x = x_ref[...]
    # Explicit hi/lo split -> three native bf16 MXU passes with f32 accumulate.
    # Error is bounded by the dropped x_lo*w_lo term: ~1e-6 for a K=10 dot.
    x_hi = x.astype(jnp.bfloat16)
    x_lo = (x - x_hi.astype(jnp.float32)).astype(jnp.bfloat16)
    w_hi = w_hi_ref[...]
    w_lo = w_lo_ref[...]
    acc = jnp.dot(x_hi, w_hi, preferred_element_type=jnp.float32)
    acc = acc + jnp.dot(x_hi, w_lo, preferred_element_type=jnp.float32)
    acc = acc + jnp.dot(x_lo, w_hi, preferred_element_type=jnp.float32)
    o_ref[...] = acc + b_ref[0]


def high2low_simple(x, w, b, *, block_rows=2048):
    """x: (B, 10) f32, w: (1, 10) f32 (PyTorch layout), b: (1,) f32 -> (B, 1)."""
    assert x.ndim == 2 and x.shape[1] == IN_FEATURES
    assert block_rows % ROW_ALIGN == 0, "block_rows must be a multiple of 8"
    out_dtype = x.dtype
    B = x.shape[0]

    # ---- layout: (B, 10) -> (n_rows, 1280); free reshape when B % 1024 == 0.
    Bp = _round_up(B, GROUP * ROW_ALIGN)
    if Bp != B:
        # One extra pass over x only for unaligned batches.
        x = jnp.pad(x, ((0, Bp - B), (0, 0)))
    n_rows = Bp // GROUP
    x_g = x.reshape(n_rows, LANES).astype(jnp.float32)

    # ---- block-diagonal weights: W_big[10*j + k, j] = w[k], split into bf16 hi/lo.
    w_col = w.reshape(IN_FEATURES, 1).astype(jnp.float32)
    w_big = jnp.kron(jnp.eye(GROUP, dtype=jnp.float32), w_col)          # (1280, 128)
    w_hi = w_big.astype(jnp.bfloat16)
    w_lo = (w_big - w_hi.astype(jnp.float32)).astype(jnp.bfloat16)
    bias = b.reshape(1).astype(jnp.float32)

    # ---- tile selection: as big as VMEM allows, but >=2 grid blocks when there
    #      is enough work (v7x has two TensorCores to shard the grid over).
    if n_rows > block_rows:
        tbg = block_rows
    else:
        tbg = max(ROW_ALIGN, _round_up(n_rows // 2, ROW_ALIGN))
        tbg = min(tbg, n_rows)
    grid = (pl.cdiv(n_rows, tbg),)

    # ---- VMEM budget (double-buffered in/out + resident weights + slack).
    in_bytes = 4 * tbg * LANES
    out_bytes = 4 * tbg * GROUP
    w_bytes = 2 * 2 * LANES * GROUP                      # two bf16 matrices
    vmem_limit = 2 * (in_bytes + out_bytes) + 2 * w_bytes + (4 << 20)
    vmem_limit = max(vmem_limit, 32 << 20)
    assert vmem_limit <= (56 << 20), "block_rows too large for v7x's 64 MiB VMEM"

    out_g = pl.pallas_call(
        linear_kernel,
        out_shape=jax.ShapeDtypeStruct((n_rows, GROUP), jnp.float32),
        grid_spec=pltpu.PrefetchScalarGridSpec(
            num_scalar_prefetch=1,
            grid=grid,
            in_specs=[
                pl.BlockSpec((tbg, LANES), lambda i, b_sm: (i, 0)),
                pl.BlockSpec((LANES, GROUP), lambda i, b_sm: (0, 0)),
                pl.BlockSpec((LANES, GROUP), lambda i, b_sm: (0, 0)),
            ],
            out_specs=pl.BlockSpec((tbg, GROUP), lambda i, b_sm: (i, 0)),
        ),
        compiler_params=pltpu.CompilerParams(
            dimension_semantics=("parallel",),
            vmem_limit_bytes=int(vmem_limit),
        ),
        cost_estimate=pl.CostEstimate(
            flops=2 * 3 * n_rows * LANES * GROUP,
            transcendentals=0,
            bytes_accessed=4 * Bp * IN_FEATURES + 4 * Bp + w_bytes + 4,
        ),
    )(bias, x_g, w_hi, w_lo)

    y = out_g.reshape(Bp, OUT_FEATURES)
    if Bp != B:
        y = y[:B]
    return y.astype(out_dtype)


if __name__ == "__main__":
    key = jax.random.PRNGKey(0)
    kx, kw, kb = jax.random.split(key, 3)

    # Deterministic params (mimics nn.Linear's uniform(-1/sqrt(10), 1/sqrt(10))).
    bound = 1.0 / jnp.sqrt(jnp.float32(IN_FEATURES))
    w = jax.random.uniform(kw, (OUT_FEATURES, IN_FEATURES), jnp.float32, -bound, bound)
    b = jax.random.uniform(kb, (OUT_FEATURES,), jnp.float32, -bound, bound)

    def ref_forward(x):
        # Exact-f32 VPU reference (no MXU rounding on the reference side).
        return jnp.sum(x * w.reshape(1, IN_FEATURES), axis=1, keepdims=True) + b

    # Cases exercise: padded batch (B=200 -> 1024), aligned batch with a
    # 2-block grid (B=2048), and a multi-block grid with a partial tail block
    # plus padding (B=2176, block_rows=16).
    cases = [(200, 2048), (2048, 2048), (2176, 16)]
    for B, block_rows in cases:
        x = jax.random.normal(kx, (B, IN_FEATURES), dtype=jnp.float32)
        out = high2low_simple(x, w, b, block_rows=block_rows)
        jax.block_until_ready(out)
        assert out.shape == (B, OUT_FEATURES)
        ref = ref_forward(x)
        assert jnp.allclose(out, ref, atol=1e-4, rtol=1e-4), (
            f"mismatch for B={B}, block_rows={block_rows}: "
            f"max abs err {float(jnp.max(jnp.abs(out - ref)))}")

    print("KERNEL_OK")
</pallas_src>

<mosaic_0001>
module attributes {stable_mosaic.version = 11 : i64} {
  func.func @linear_kernel(%arg0: i32, %arg1: memref<1xf32, #tpu.memory_space<smem>>, %arg2: memref<8x1280xf32, #tpu.memory_space<vmem>>, %arg3: memref<1280x128xbf16, #tpu.memory_space<vmem>>, %arg4: memref<1280x128xbf16, #tpu.memory_space<vmem>>, %arg5: memref<8x128xf32, #tpu.memory_space<vmem>>) attributes {dimension_semantics = [#tpu.dimension_semantics<parallel>], iteration_bounds = array<i64: 1>, scalar_prefetch = 1 : i64, scratch_operands = 0 : i64, tpu.core_type = #tpu.core_type<tc>, window_params = [{transform_indices = @transform_0, window_bounds = array<i64: 8, 1280>}, {pipeline_mode = #tpu.pipeline_mode<synchronous>, transform_indices = @transform_1, window_bounds = array<i64: 1280, 128>}, {pipeline_mode = #tpu.pipeline_mode<synchronous>, transform_indices = @transform_2, window_bounds = array<i64: 1280, 128>}, {transform_indices = @transform_3, window_bounds = array<i64: 8, 128>}]} {
    %c0 = arith.constant 0 : index
    %c0_0 = arith.constant 0 : index
    %0 = vector.load %arg2[%c0, %c0_0] : memref<8x1280xf32, #tpu.memory_space<vmem>>, vector<8x1280xf32>
    %1 = arith.truncf %0 : vector<8x1280xf32> to vector<8x1280xbf16>
    %2 = arith.extf %1 : vector<8x1280xbf16> to vector<8x1280xf32>
    %3 = arith.subf %0, %2 : vector<8x1280xf32>
    %4 = arith.truncf %3 : vector<8x1280xf32> to vector<8x1280xbf16>
    %c0_1 = arith.constant 0 : index
    %c0_2 = arith.constant 0 : index
    %5 = vector.load %arg3[%c0_1, %c0_2] : memref<1280x128xbf16, #tpu.memory_space<vmem>>, vector<1280x128xbf16>
    %c0_3 = arith.constant 0 : index
    %c0_4 = arith.constant 0 : index
    %6 = vector.load %arg4[%c0_3, %c0_4] : memref<1280x128xbf16, #tpu.memory_space<vmem>>, vector<1280x128xbf16>
    %cst = arith.constant dense<0.000000e+00> : vector<8x128xf32>
    %7 = tpu.matmul %1, %5, %cst {dimension_numbers = #tpu.dot_dimension_numbers<[1], [0], [0], [1], [0, 0, 1, 1], [], []>} : vector<8x1280xbf16>, vector<1280x128xbf16>, vector<8x128xf32> -> vector<8x128xf32>
    %cst_5 = arith.constant dense<0.000000e+00> : vector<8x128xf32>
    %8 = tpu.matmul %1, %6, %cst_5 {dimension_numbers = #tpu.dot_dimension_numbers<[1], [0], [0], [1], [0, 0, 1, 1], [], []>} : vector<8x1280xbf16>, vector<1280x128xbf16>, vector<8x128xf32> -> vector<8x128xf32>
    %9 = arith.addf %7, %8 : vector<8x128xf32>
    %cst_6 = arith.constant dense<0.000000e+00> : vector<8x128xf32>
    %10 = tpu.matmul %4, %5, %cst_6 {dimension_numbers = #tpu.dot_dimension_numbers<[1], [0], [0], [1], [0, 0, 1, 1], [], []>} : vector<8x1280xbf16>, vector<1280x128xbf16>, vector<8x128xf32> -> vector<8x128xf32>
    %11 = arith.addf %9, %10 : vector<8x128xf32>
    %c0_7 = arith.constant 0 : index
    %12 = memref.load %arg1[%c0_7] : memref<1xf32, #tpu.memory_space<smem>>
    %13 = vector.broadcast %12 : f32 to vector<8x128xf32>
    %14 = arith.addf %11, %13 : vector<8x128xf32>
    %c0_8 = arith.constant 0 : index
    %c0_9 = arith.constant 0 : index
    %15 = vector.load %arg5[%c0_8, %c0_9] : memref<8x128xf32, #tpu.memory_space<vmem>>, vector<8x128xf32>
    tpu.vector_store %arg5[%c0_8, %c0_9], %14 {strides = array<i32>} : memref<8x128xf32, #tpu.memory_space<vmem>>, vector<8x128xf32>,
    return
  }
  func.func @transform_0(%arg0: i32, %arg1: memref<1xf32, #tpu.memory_space<smem>>) -> (i32, i32) {
    %c0_i32 = arith.constant 0 : i32
    %c0_i32_0 = arith.constant 0 : i32
    return %arg0, %c0_i32 : i32, i32
  }
  func.func @transform_1(%arg0: i32, %arg1: memref<1xf32, #tpu.memory_space<smem>>) -> (i32, i32) {
    %c0_i32 = arith.constant 0 : i32
    %c0_i32_0 = arith.constant 0 : i32
    %c0_i32_1 = arith.constant 0 : i32
    return %c0_i32, %c0_i32_0 : i32, i32
  }
  func.func @transform_2(%arg0: i32, %arg1: memref<1xf32, #tpu.memory_space<smem>>) -> (i32, i32) {
    %c0_i32 = arith.constant 0 : i32
    %c0_i32_0 = arith.constant 0 : i32
    %c0_i32_1 = arith.constant 0 : i32
    return %c0_i32, %c0_i32_0 : i32, i32
  }
  func.func @transform_3(%arg0: i32, %arg1: memref<1xf32, #tpu.memory_space<smem>>) -> (i32, i32) {
    %c0_i32 = arith.constant 0 : i32
    %c0_i32_0 = arith.constant 0 : i32
    return %arg0, %c0_i32 : i32, i32
  }
}

</mosaic_0001>

<bundles_post_ra>
// kernel: tpu_custom_call.1
= control target key start
LH: loop header
LB: loop body
LE: loop exit
PB: predicated region body
PF: predicated region fallthrough
CT: control target
= control target key end

     0   :  { %10 = vsyncpa [#allocation5], 0  ;;  %s3266_s0 = inlined_call_operand.<no memory space> [shape: f32[1], index: 0, kind: input, shape index: {}]   ;;  %s3267_s1 = inlined_call_operand.hbm [shape: f32[8,1280], index: 1, kind: input, shape index: {}]   ;;  %s3268_s2 = inlined_call_operand.hbm [shape: bf16[1280,128], index: 2, kind: input, shape index: {}]   ;;  %s3269_s3 = inlined_call_operand.hbm [shape: bf16[1280,128], index: 3, kind: input, shape index: {}]   ;;  %s3270_s4 = inlined_call_operand.hbm [shape: f32[8,128], index: 4, kind: output, shape index: {}]  }
   0x1   :  { %11 = vsyncpa [#allocation8], 0 }
   0x2   :  { %12 = vsyncpa [#allocation6], 0  ;;  %s2761_s15 = smov [#allocation7]   ;;  %s2667_s19 = scalar_lea.hbm %s3268_s2, 10240 }
   0x3   :  { %s28_s16 = sshll.u32 %s2761_s15, 4  ;;  %p2668_p0 = scmp.ne.s32.totalorder %s3268_s2, %s2667_s19  ;;  %s29_s16 = int_to_ptr.vmem [resolvable:$true] %s28_s16 }
   0x4   :  { %p2671_p1 = scmp.lt.u32.totalorder %s2667_s19, %s3268_s2 }
   0x6   :  { %p2673_p2 = pnand %p2671_p1, %p2668_p0 }
   0x8   :  { %2676 = shalt.err (!%p2673_p2)
}
   0x9   :  { %s2677_s24 = scalar_lea.vmem %s29_s16, 10240  ;;  %p2682_p4 = scmp.lt.s32.totalorder %s29_s16, %s29_s16 }
   0xa   :  { %p2678_p3 = scmp.ne.s32.totalorder %s29_s16, %s2677_s24  ;;  %p2683_p5 = scmp.lt.s32.totalorder %s2677_s24, %s2677_s24 }
   0xc   :  { %p2684_p6 = por %p2683_p5, %p2682_p4 }
   0xe   :  { %p2685_p7 = pnand %p2684_p6, %p2678_p3 }
  0x10   :  { %2688 = shalt.err (!%p2685_p7)
}
  0x11   :  { %s2762_s25 = smov 64   ;;  %s2763_s26 = smov 4  }
  0x12   :  { %34 = dma.hbm_to_vmem [thread:$0]  %s3268_s2, 10240, %s29_s16, [#allocation8], %s2762_s25, %s2762_s25, %s2763_s26  }
  0x13   :  { %s2764_s29 = smov [#allocation4]   ;;  %s2765_s5 = smov [#allocation9]  }
  0x14   :  { %s19_s30 = sshll.u32 %s2764_s29, 4  ;;  %s40_s6 = sshll.u32 %s2765_s5, 4  ;;  %s20_s30 = int_to_ptr.vmem [resolvable:$true] %s19_s30  ;;  %s41_s6 = int_to_ptr.vmem [resolvable:$true] %s40_s6 }
  0x15   :  { %s2689_s9 = scalar_lea.hbm %s3267_s1, 1280 }
  0x16   :  { %p2690_p8 = scmp.ne.s32.totalorder %s3267_s1, %s2689_s9  ;;  %p2693_p9 = scmp.lt.u32.totalorder %s2689_s9, %s3267_s1 }
  0x18   :  { %p2695_p10 = pnand %p2693_p9, %p2690_p8 }
  0x1a   :  { %2698 = shalt.err (!%p2695_p10)
}
  0x1b   :  { %s2699_s2 = scalar_lea.vmem %s20_s30, 1280  ;;  %p2704_p12 = scmp.lt.s32.totalorder %s20_s30, %s20_s30 }
  0x1c   :  { %p2700_p11 = scmp.ne.s32.totalorder %s20_s30, %s2699_s2  ;;  %p2705_p13 = scmp.lt.s32.totalorder %s2699_s2, %s2699_s2 }
  0x1e   :  { %p2706_p0 = por %p2705_p13, %p2704_p12 }
  0x20   :  { %p2707_p1 = pnand %p2706_p0, %p2700_p11 }
  0x22   :  { %2710 = shalt.err (!%p2707_p1)
}
  0x23   :  { %22 = dma.hbm_to_vmem [thread:$0]  %s3267_s1, 1280, %s20_s30, [#allocation5]  }
  0x24   :  { %s2711_s18 = scalar_lea.hbm %s3269_s3, 10240 }
  0x25   :  { %p2712_p2 = scmp.ne.s32.totalorder %s3269_s3, %s2711_s18  ;;  %p2715_p3 = scmp.lt.u32.totalorder %s2711_s18, %s3269_s3 }
  0x27   :  { %p2717_p4 = pnand %p2715_p3, %p2712_p2 }
  0x29   :  { %2720 = shalt.err (!%p2717_p4)
}
  0x2a   :  { %s2721_s23 = scalar_lea.vmem %s41_s6, 10240  ;;  %p2726_p6 = scmp.lt.s32.totalorder %s41_s6, %s41_s6 }
  0x2b   :  { %p2722_p5 = scmp.ne.s32.totalorder %s41_s6, %s2721_s23  ;;  %p2727_p7 = scmp.lt.s32.totalorder %s2721_s23, %s2721_s23 }
  0x2d   :  { %p2728_p8 = por %p2727_p7, %p2726_p6 }
  0x2f   :  { %p2729_p9 = pnand %p2728_p8, %p2722_p5 }
  0x31   :  { %2732 = shalt.err (!%p2729_p9)
}
  0x32   :  { %46 = dma.hbm_to_vmem [thread:$0]  %s3269_s3, 10240, %s41_s6, [#allocation8], %s2762_s25, %s2762_s25, %s2763_s26  }
  0x33   :  { %2755 = dma.done.wait [#allocation5], 1280  }
  0x34   :  { %2756 = vsyncadd [#allocation5], 4294966016 }
  0x35   :  { %2757 = dma.done.wait [#allocation8], 20480  }
  0x36   :  { %2758 = vsyncadd [#allocation8], 4294946816  ;;  %v2504_v0 = vld [vmem:[#allocation9 + $0x40] sm:$0xff]   ;;  %v2508_v4 = vld [vmem:[#allocation9 + $0x48] sm:$0xff]   ;;  %s2766_s26 = smov [#allocation10]  }
  0x37   :  { %v2505_v1 = vld [vmem:[#allocation9 + $0xc0] sm:$0xff]   ;;  %2168 = vmatprep.subr.bf16.mxu0 %v2504_v0  ;;  %v2509_v5 = vld [vmem:[#allocation9 + $0xc8] sm:$0xff]   ;;  %v2512_v8 = vld [vmem:[#allocation9 + $0x50] sm:$0xff]   ;;  %s1998_s27 = sshll.u32 %s2766_s26, 4  ;;  %s1999_s27 = int_to_ptr.vmem [resolvable:$true] %s1998_s27 }
  0x38   :  { %v2506_v2 = vld [vmem:[#allocation9] sm:$0xff]   ;;  %2190 = vmatprep.subr.bf16.mxu1 %v2505_v1  ;;  %v2510_v6 = vld [vmem:[#allocation9 + $0x8] sm:$0xff]   ;;  %v2513_v9 = vld [vmem:[#allocation9 + $0xd0] sm:$0xff]   ;;  %s2733_s28 = scalar_lea.vmem %s1999_s27, 128  ;;  %p2738_p11 = scmp.lt.s32.totalorder %s1999_s27, %s1999_s27 }
  0x39   :  { %v2507_v3 = vld [vmem:[#allocation9 + $0x80] sm:$0xff]   ;;  %2169 = vmatpush3.bf16.msra.mxu0 %v2506_v2  ;;  %v2511_v7 = vld [vmem:[#allocation9 + $0x88] sm:$0xff]   ;;  %v2514_v10 = vld [vmem:[#allocation9 + $0x10] sm:$0xff]   ;;  %p2734_p10 = scmp.ne.s32.totalorder %s1999_s27, %s2733_s28  ;;  %p2739_p12 = scmp.lt.s32.totalorder %s2733_s28, %s2733_s28 }
  0x3a   :  { %2191 = vmatpush3.bf16.msra.mxu1 %v2507_v3  ;;  %2170 = vmatprep.subr.bf16.mxu0 %v2508_v4  ;;  %v2515_v11 = vld [vmem:[#allocation9 + $0x90] sm:$0xff]   ;;  %v2516_v12 = vld [vmem:[#allocation9 + $0x58] sm:$0xff]   ;;  %v2520_v16 = vld [vmem:[#allocation9 + $0x60] sm:$0xff]  }
  0x3b   :  { %2192 = vmatprep.subr.bf16.mxu1 %v2509_v5  ;;  %v2517_v13 = vld [vmem:[#allocation9 + $0xd8] sm:$0xff]   ;;  %v2521_v17 = vld [vmem:[#allocation9 + $0xe0] sm:$0xff]   ;;  %v2524_v20 = vld [vmem:[#allocation9 + $0x68] sm:$0xff]   ;;  %p2740_p13 = por %p2739_p12, %p2738_p11 }
  0x3c   :  { %v2518_v14 = vld [vmem:[#allocation9 + $0x18] sm:$0xff]   ;;  %v2522_v18 = vld [vmem:[#allocation9 + $0x20] sm:$0xff]   ;;  %v2525_v21 = vld [vmem:[#allocation9 + $0xe8] sm:$0xff]  }
  0x3d   :  { %2171 = vmatpush3.bf16.msra.mxu0 %v2510_v6  ;;  %v2519_v15 = vld [vmem:[#allocation9 + $0x98] sm:$0xff]   ;;  %v2523_v19 = vld [vmem:[#allocation9 + $0xa0] sm:$0xff]   ;;  %v2526_v22 = vld [vmem:[#allocation9 + $0x28] sm:$0xff]   ;;  %p2741_p0 = pnand %p2740_p13, %p2734_p10 }
  0x3e   :  { %2193 = vmatpush3.bf16.msra.mxu1 %v2511_v7  ;;  %2172 = vmatprep.subr.bf16.mxu0 %v2512_v8  ;;  %v2527_v23 = vld [vmem:[#allocation9 + $0xa8] sm:$0xff]   ;;  %v2528_v24 = vld [vmem:[#allocation9 + $0x70] sm:$0xff]   ;;  %v2532_v28 = vld [vmem:[#allocation9 + $0x78] sm:$0xff]  }
  0x3f   :  { %2194 = vmatprep.subr.bf16.mxu1 %v2513_v9  ;;  %v2529_v25 = vld [vmem:[#allocation9 + $0xf0] sm:$0xff]   ;;  %v2533_v29 = vld [vmem:[#allocation9 + $0xf8] sm:$0xff]   ;;  %v60_v33 = vld [vmem:[#allocation4 + $0x18] sm:$0xff] }
  0x40   :  { %v2530_v26 = vld [vmem:[#allocation9 + $0x30] sm:$0xff]   ;;  %v2534_v30 = vld [vmem:[#allocation9 + $0x38] sm:$0xff]   ;;  %v2840_v36 = vpack.c.bf16 %v60_v33, %v60_v33  ;;  %v59_v38 = vld [vmem:[#allocation4 + $0x10] sm:$0xff] }
  0x41   :  { %2173 = vmatpush3.bf16.msra.mxu0 %v2514_v10  ;;  %v2531_v27 = vld [vmem:[#allocation9 + $0xb0] sm:$0xff]   ;;  %v2535_v31 = vld [vmem:[#allocation9 + $0xb8] sm:$0xff]   ;;  %v2844_v39 = vpack.c.bf16 %v59_v38, %v59_v38  ;;  %v2536_v40 = vld [vmem:[#allocation9 + $0x140] sm:$0xff]  }
  0x42   :  { %2195 = vmatpush3.bf16.msra.mxu1 %v2515_v11  ;;  %2174 = vmatprep.subr.bf16.mxu0 %v2516_v12  ;;  %v2834_v32 = vld [vmem:[#allocation4 + $0x8] sm:$0xff]  ;;  %v57_v34 = vld [vmem:[#allocation4] sm:$0xff]  ;;  %v2537_v41 = vld [vmem:[#allocation9 + $0x1c0] sm:$0xff]  }
  0x43   :  { %2196 = vmatprep.subr.bf16.mxu1 %v2517_v13  ;;  %v2838_v35 = vpack.c.bf16 %v2834_v32, %v2834_v32  ;;  %v2842_v37 = vpack.c.bf16 %v57_v34, %v57_v34  ;;  %979 = vmatprep.mubr.bf16.mxu1 %v2840_v36  ;;  %v2538_v42 = vld [vmem:[#allocation9 + $0x100] sm:$0xff]   ;;  %v2540_v44 = vld [vmem:[#allocation9 + $0x148] sm:$0xff]   ;;  %v2544_v48 = vld [vmem:[#allocation9 + $0x150] sm:$0xff]  }
  0x44   :  { %v2539_v43 = vld [vmem:[#allocation9 + $0x180] sm:$0xff]   ;;  %v2541_v45 = vld [vmem:[#allocation9 + $0x1c8] sm:$0xff]   ;;  %v2545_v49 = vld [vmem:[#allocation9 + $0x1d0] sm:$0xff]  }
  0x45   :  { %2175 = vmatpush3.bf16.msra.mxu0 %v2518_v14  ;;  %939 = vmatprep.mubr.bf16.mxu0 %v2838_v35  ;;  %v2542_v46 = vld [vmem:[#allocation9 + $0x108] sm:$0xff]   ;;  %v2546_v50 = vld [vmem:[#allocation9 + $0x110] sm:$0xff]   ;;  %v2548_v52 = vld [vmem:[#allocation9 + $0x158] sm:$0xff]   ;;  %v78_v10 = vunpack.c.l.bf16 %v2838_v35 }
  0x46   :  { %2197 = vmatpush3.bf16.msra.mxu1 %v2519_v15  ;;  %2176 = vmatprep.subr.bf16.mxu0 %v2520_v16  ;;  %v2543_v47 = vld [vmem:[#allocation9 + $0x188] sm:$0xff]   ;;  %v2547_v51 = vld [vmem:[#allocation9 + $0x190] sm:$0xff]   ;;  %v2549_v53 = vld [vmem:[#allocation9 + $0x1d8] sm:$0xff]  }
  0x47   :  { %2198 = vmatprep.subr.bf16.mxu1 %v2521_v17  ;;  %v2550_v54 = vld [vmem:[#allocation9 + $0x118] sm:$0xff]   ;;  %v2552_v56 = vld [vmem:[#allocation9 + $0x160] sm:$0xff]   ;;  %v2556_v60 = vld [vmem:[#allocation9 + $0x168] sm:$0xff]   ;;  %v2870_v16 = vsub.f32 %v2834_v32, %v78_v10 }
  0x48   :  { %v2551_v55 = vld [vmem:[#allocation9 + $0x198] sm:$0xff]   ;;  %v2553_v57 = vld [vmem:[#allocation9 + $0x1e0] sm:$0xff]   ;;  %v2557_v61 = vld [vmem:[#allocation9 + $0x1e8] sm:$0xff]  }
  0x49   :  { %2177 = vmatpush3.bf16.msra.mxu0 %v2522_v18  ;;  %v2554_v58 = vld [vmem:[#allocation9 + $0x120] sm:$0xff]   ;;  %v2558_v62 = vld [vmem:[#allocation9 + $0x128] sm:$0xff]   ;;  %v2560_v0 = vld [vmem:[#allocation9 + $0x170] sm:$0xff]  }
  0x4a   :  { %2199 = vmatpush3.bf16.msra.mxu1 %v2523_v19  ;;  %2178 = vmatprep.subr.bf16.mxu0 %v2524_v20  ;;  %v2555_v59 = vld [vmem:[#allocation9 + $0x1a0] sm:$0xff]   ;;  %v2559_v63 = vld [vmem:[#allocation9 + $0x1a8] sm:$0xff]   ;;  %v2561_v1 = vld [vmem:[#allocation9 + $0x1f0] sm:$0xff]  }
  0x4b   :  { %2200 = vmatprep.subr.bf16.mxu1 %v2525_v21  ;;  %v2562_v2 = vld [vmem:[#allocation9 + $0x130] sm:$0xff]   ;;  %v2564_v4 = vld [vmem:[#allocation9 + $0x178] sm:$0xff]   ;;  %v2863_v13 = vld [vmem:[#allocation4 + $0x38] sm:$0xff] }
  0x4c   :  { %v2563_v3 = vld [vmem:[#allocation9 + $0x1b0] sm:$0xff]   ;;  %v2565_v5 = vld [vmem:[#allocation9 + $0x1f8] sm:$0xff]   ;;  %v2867_v14 = vpack.c.bf16 %v2863_v13, %v2863_v13  ;;  %v2568_v15 = vld [vmem:[#allocation9 + $0x240] sm:$0xff]  }
  0x4d   :  { %2179 = vmatpush3.bf16.msra.mxu0 %v2526_v22  ;;  %v2566_v6 = vld [vmem:[#allocation9 + $0x138] sm:$0xff]   ;;  %v2852_v9 = vld [vmem:[#allocation4 + $0x20] sm:$0xff]  ;;  %v2873_v17 = vld [vmem:[#allocation7 + $0x40] sm:$0xff]  }
  0x4e   :  { %2201 = vmatpush3.bf16.msra.mxu1 %v2527_v23  ;;  %2180 = vmatprep.subr.bf16.mxu0 %v2528_v24  ;;  %v2567_v7 = vld [vmem:[#allocation9 + $0x1b8] sm:$0xff]   ;;  %3304 = vst [vmem:[#allocation14_spill] sm:$0xff] %v2852_v9  ;;  %v2861_v12 = vpack.c.bf16 %v2852_v9, %v2852_v9  ;;  %v2875_v18 = vld [vmem:[#allocation4 + $0x30] sm:$0xff]  ;;  %v2572_v22 = vld [vmem:[#allocation9 + $0x248] sm:$0xff]  }
  0x4f   :  { %2202 = vmatprep.subr.bf16.mxu1 %v2529_v25  ;;  %v2850_v8 = vld [vmem:[#allocation4 + $0x28] sm:$0xff]  ;;  %3306 = vst [vmem:[#allocation16_spill] sm:$0xff] %v2875_v18  ;;  %v2881_v19 = vpack.c.bf16 %v2875_v18, %v2875_v18  ;;  %v2570_v20 = vld [vmem:[#allocation9 + $0x200] sm:$0xff]   ;;  %v2888_v23 = vld [vmem:[#allocation7 + $0x48] sm:$0xff]  }
  0x50   :  { %v2857_v11 = vpack.c.bf16 %v2850_v8, %v2850_v8  ;;  %3305 = vst [vmem:[#allocation15_spill] sm:$0xff] %v2861_v12  ;;  %v2884_v21 = vld [vmem:[#allocation7] sm:$0xff]   ;;  %v2574_v24 = vld [vmem:[#allocation9 + $0x208] sm:$0xff]   ;;  %v2582_v32 = vld [vmem:[#allocation9 + $0x218] sm:$0xff]  }
  0x51   :  { %2181 = vmatpush3.bf16.msra.mxu0 %v2530_v26  ;;  %v2892_v25 = vld [vmem:[#allocation7 + $0x8] sm:$0xff]   ;;  %v2576_v26 = vld [vmem:[#allocation9 + $0x250] sm:$0xff]   ;;  %v2904_v33 = vld [vmem:[#allocation7 + $0x18] sm:$0xff]  }
  0x52   :  { %2203 = vmatpush3.bf16.msra.mxu1 %v2531_v27  ;;  %2182 = vmatprep.subr.bf16.mxu0 %v2532_v28  ;;  %v2895_v27 = vld [vmem:[#allocation7 + $0x50] sm:$0xff]   ;;  %v2584_v34 = vld [vmem:[#allocation9 + $0x260] sm:$0xff]   ;;  %v2993_v10 = vld [vmem:[#allocation7 + $0x98] sm:$0xff]  }
  0x53   :  { %2204 = vmatprep.subr.bf16.mxu1 %v2533_v29  ;;  %v2578_v28 = vld [vmem:[#allocation9 + $0x210] sm:$0xff]   ;;  %v2586_v38 = vld [vmem:[#allocation9 + $0x220] sm:$0xff]  }
  0x54   :  { %v2898_v29 = vld [vmem:[#allocation7 + $0x10] sm:$0xff]   ;;  %v3051_v18 = vld [vmem:[#allocation7 + $0x1c0] sm:$0xff]  }
  0x55   :  { %2183 = vmatpush3.bf16.msra.mxu0 %v2534_v30  ;;  %v2580_v30 = vld [vmem:[#allocation9 + $0x258] sm:$0xff]   ;;  %v3057_v9 = vld [vmem:[#allocation7 + $0x180] sm:$0xff]  }
  0x56   :  { %2205 = vmatpush3.bf16.msra.mxu1 %v2535_v31  ;;  %2212 = vmatprep.subr.bf16.mxu0 %v2536_v40  ;;  %v2901_v31 = vld [vmem:[#allocation7 + $0x58] sm:$0xff]   ;;  %v2910_v40 = vld [vmem:[#allocation7 + $0x20] sm:$0xff]  }
  0x57   :  { %2234 = vmatprep.subr.bf16.mxu1 %v2537_v41  ;;  %v2588_v41 = vld [vmem:[#allocation9 + $0x268] sm:$0xff]  }
  0x58   :  { %940 = vmatmul.mubr.bf16.vlgmr.msra.gmra.mrb[0].mxu0 %v2842_v37 }
  0x59   :  { %980 = vmatmul.mubr.bf16.vlgmr.msra.gmra.mrb[0].mxu1 %v2844_v39  ;;  %2213 = vmatpush3.bf16.msra.mxu0 %v2538_v42  ;;  %v2913_v42 = vld [vmem:[#allocation7 + $0x68] sm:$0xff]  }
  0x5a   :  { %2235 = vmatpush3.bf16.msra.mxu1 %v2539_v43  ;;  %2214 = vmatprep.subr.bf16.mxu0 %v2540_v44  ;;  %v2590_v43 = vld [vmem:[#allocation9 + $0x228] sm:$0xff]  }
  0x5b   :  { %2236 = vmatprep.subr.bf16.mxu1 %v2541_v45  ;;  %1019 = vmatprep.mubr.bf16.mxu0 %v2857_v11  ;;  %v2916_v44 = vld [vmem:[#allocation7 + $0x28] sm:$0xff]   ;;  %v2592_v45 = vld [vmem:[#allocation9 + $0x270] sm:$0xff]  }
  0x5c   :  { %1059 = vmatprep.mubr.bf16.mxu1 %v2867_v14 }
  0x5d   :  { %2215 = vmatpush3.bf16.msra.mxu0 %v2542_v46  ;;  %v2919_v46 = vld [vmem:[#allocation7 + $0x70] sm:$0xff]  }
  0x5e   :  { %2237 = vmatpush3.bf16.msra.mxu1 %v2543_v47  ;;  %2216 = vmatprep.subr.bf16.mxu0 %v2544_v48  ;;  %v2594_v47 = vld [vmem:[#allocation9 + $0x230] sm:$0xff]  }
  0x5f   :  { %2238 = vmatprep.subr.bf16.mxu1 %v2545_v49  ;;  %v2922_v48 = vld [vmem:[#allocation7 + $0x30] sm:$0xff]   ;;  %v2596_v49 = vld [vmem:[#allocation9 + $0x278] sm:$0xff]  }
  0x61   :  { %2217 = vmatpush3.bf16.msra.mxu0 %v2546_v50  ;;  %v2925_v50 = vld [vmem:[#allocation7 + $0x78] sm:$0xff]  }
  0x62   :  { %2239 = vmatpush3.bf16.msra.mxu1 %v2547_v51  ;;  %2218 = vmatprep.subr.bf16.mxu0 %v2548_v52  ;;  %v2598_v51 = vld [vmem:[#allocation9 + $0x238] sm:$0xff]   ;;  %v82_v52 = vunpack.c.l.bf16 %v2857_v11 }
  0x63   :  { %2240 = vmatprep.subr.bf16.mxu1 %v2549_v53  ;;  %v2929_v53 = vld [vmem:[#allocation7 + $0x38] sm:$0xff]  }
  0x65   :  { %2219 = vmatpush3.bf16.msra.mxu0 %v2550_v54  ;;  %v2931_v54 = vld [vmem:[#allocation4 + $0x48] sm:$0xff] }
  0x66   :  { %2241 = vmatpush3.bf16.msra.mxu1 %v2551_v55  ;;  %2220 = vmatprep.subr.bf16.mxu0 %v2552_v56  ;;  %v2935_v55 = vpack.c.bf16 %v2931_v54, %v2931_v54  ;;  %v2937_v56 = vld [vmem:[#allocation4 + $0x40] sm:$0xff] }
  0x67   :  { %2242 = vmatprep.subr.bf16.mxu1 %v2553_v57  ;;  %3307 = vst [vmem:[#allocation17_spill] sm:$0xff] %v2937_v56  ;;  %v2940_v57 = vsub.f32 %v2850_v8, %v82_v52  ;;  %v2990_v8 = vld [vmem:[#allocation7 + $0x158] sm:$0xff]  }
  0x68   :  { %v3045_v52 = vld [vmem:[#allocation7 + $0x138] sm:$0xff]  }
  0x69   :  { %2221 = vmatpush3.bf16.msra.mxu0 %v2554_v58  ;;  %v2945_v58 = vpack.c.bf16 %v2937_v56, %v2937_v56  ;;  %3316 = vst [vmem:[#allocation26_spill] sm:$0xff] %v3045_v52 }
  0x6a   :  { %2243 = vmatpush3.bf16.msra.mxu1 %v2555_v59  ;;  %2222 = vmatprep.subr.bf16.mxu0 %v2556_v60  ;;  %v2947_v59 = vld [vmem:[#allocation7 + $0xc0] sm:$0xff]  }
  0x6b   :  { %2244 = vmatprep.subr.bf16.mxu1 %v2557_v61  ;;  %v2950_v60 = vld [vmem:[#allocation7 + $0x140] sm:$0xff]  }
  0x6c   :  { %v2954_v61 = vld [vmem:[#allocation7 + $0x80] sm:$0xff]  }
  0x6d   :  { %2223 = vmatpush3.bf16.msra.mxu0 %v2558_v62  ;;  %v2958_v62 = vld [vmem:[#allocation7 + $0x100] sm:$0xff]  }
  0x6e   :  { %2245 = vmatpush3.bf16.msra.mxu1 %v2559_v63  ;;  %2224 = vmatprep.subr.bf16.mxu0 %v2560_v0  ;;  %v2961_v63 = vld [vmem:[#allocation7 + $0xc8] sm:$0xff]  }
  0x6f   :  { %2246 = vmatprep.subr.bf16.mxu1 %v2561_v1  ;;  %v2965_v0 = vld [vmem:[#allocation7 + $0x148] sm:$0xff]  }
  0x70   :  { %v2969_v1 = vld [vmem:[#allocation7 + $0x88] sm:$0xff]  }
  0x71   :  { %2225 = vmatpush3.bf16.msra.mxu0 %v2562_v2  ;;  %v2972_v2 = vld [vmem:[#allocation7 + $0x108] sm:$0xff]  }
  0x72   :  { %2247 = vmatpush3.bf16.msra.mxu1 %v2563_v3  ;;  %2226 = vmatprep.subr.bf16.mxu0 %v2564_v4  ;;  %v2975_v3 = vld [vmem:[#allocation7 + $0xd0] sm:$0xff]  }
  0x73   :  { %2248 = vmatprep.subr.bf16.mxu1 %v2565_v5  ;;  %v2978_v4 = vld [vmem:[#allocation7 + $0x150] sm:$0xff]  }
  0x74   :  { %v2981_v5 = vld [vmem:[#allocation7 + $0x90] sm:$0xff]  }
  0x75   :  { %2227 = vmatpush3.bf16.msra.mxu0 %v2566_v6  ;;  %v2984_v6 = vld [vmem:[#allocation7 + $0x110] sm:$0xff]  }
  0x76   :  { %2249 = vmatpush3.bf16.msra.mxu1 %v2567_v7  ;;  %2256 = vmatprep.subr.bf16.mxu0 %v2568_v15  ;;  %v2987_v7 = vld [vmem:[#allocation7 + $0xd8] sm:$0xff]   ;;  %v2999_v15 = vld [vmem:[#allocation7 + $0xe0] sm:$0xff]  }
  0x77   :  { %2278 = vmatprep.subr.bf16.mxu1 %v2873_v17 }
  0x78   :  { %1020 = vmatmul.mubr.bf16.vlgmr.msra.gmra.mrb[4].mxu0 %v2861_v12 }
  0x79   :  { %1060 = vmatmul.mubr.bf16.vlgmr.msra.gmra.mrb[4].mxu1 %v2881_v19  ;;  %2257 = vmatpush3.bf16.msra.mxu0 %v2570_v20  ;;  %v3002_v20 = vld [vmem:[#allocation7 + $0x160] sm:$0xff]  }
  0x7a   :  { %2279 = vmatpush3.bf16.msra.mxu1 %v2884_v21  ;;  %1619 = vmatprep.mubr.bf16.mxu1 %v2838_v35  ;;  %v2907_v35 = vld [vmem:[#allocation7 + $0x60] sm:$0xff]   ;;  %3309 = vst [vmem:[#allocation19_spill] sm:$0xff] %v3002_v20 }
  0x7b   :  { %2258 = vmatprep.subr.bf16.mxu0 %v2572_v22  ;;  %2280 = vmatprep.subr.bf16.mxu1 %v2888_v23  ;;  %v3005_v22 = vld [vmem:[#allocation7 + $0xa0] sm:$0xff]  }
  0x7c   :  { %1099 = vmatprep.mubr.bf16.mxu0 %v2935_v55 }
  0x7d   :  { %2259 = vmatpush3.bf16.msra.mxu0 %v2574_v24  ;;  %v3008_v24 = vld [vmem:[#allocation7 + $0x120] sm:$0xff]  }
  0x7e   :  { %2281 = vmatpush3.bf16.msra.mxu1 %v2892_v25  ;;  %2260 = vmatprep.subr.bf16.mxu0 %v2576_v26  ;;  %3310 = vst [vmem:[#allocation20_spill] sm:$0xff] %v3008_v24  ;;  %v3011_v26 = vld [vmem:[#allocation7 + $0xe8] sm:$0xff]  }
  0x7f   :  { %2282 = vmatprep.subr.bf16.mxu1 %v2895_v27 }
  0x81   :  { %2261 = vmatpush3.bf16.msra.mxu0 %v2578_v28  ;;  %v3014_v28 = vld [vmem:[#allocation7 + $0x168] sm:$0xff]  }
  0x82   :  { %2283 = vmatpush3.bf16.msra.mxu1 %v2898_v29  ;;  %2262 = vmatprep.subr.bf16.mxu0 %v2580_v30  ;;  %3311 = vst [vmem:[#allocation21_spill] sm:$0xff] %v3014_v28  ;;  %v3017_v30 = vld [vmem:[#allocation7 + $0xa8] sm:$0xff]  }
  0x83   :  { %2284 = vmatprep.subr.bf16.mxu1 %v2901_v31 }
  0x85   :  { %2263 = vmatpush3.bf16.msra.mxu0 %v2582_v32  ;;  %v3020_v32 = vld [vmem:[#allocation7 + $0x128] sm:$0xff]  }
  0x86   :  { %2285 = vmatpush3.bf16.msra.mxu1 %v2904_v33  ;;  %2264 = vmatprep.subr.bf16.mxu0 %v2584_v34  ;;  %3312 = vst [vmem:[#allocation22_spill] sm:$0xff] %v3020_v32  ;;  %v3023_v34 = vld [vmem:[#allocation7 + $0xf0] sm:$0xff]  }
  0x87   :  { %2286 = vmatprep.subr.bf16.mxu1 %v2907_v35 }
  0x89   :  { %2265 = vmatpush3.bf16.msra.mxu0 %v2586_v38  ;;  %v3026_v38 = vld [vmem:[#allocation7 + $0x170] sm:$0xff]  }
  0x8a   :  { %2287 = vmatpush3.bf16.msra.mxu1 %v2910_v40  ;;  %2266 = vmatprep.subr.bf16.mxu0 %v2588_v41  ;;  %3313 = vst [vmem:[#allocation23_spill] sm:$0xff] %v3026_v38  ;;  %v3029_v41 = vld [vmem:[#allocation7 + $0xb0] sm:$0xff]  }
  0x8b   :  { %2288 = vmatprep.subr.bf16.mxu1 %v2913_v42 }
  0x8d   :  { %2267 = vmatpush3.bf16.msra.mxu0 %v2590_v43  ;;  %v3032_v43 = vld [vmem:[#allocation7 + $0x130] sm:$0xff]  }
  0x8e   :  { %2289 = vmatpush3.bf16.msra.mxu1 %v2916_v44  ;;  %2268 = vmatprep.subr.bf16.mxu0 %v2592_v45  ;;  %3314 = vst [vmem:[#allocation24_spill] sm:$0xff] %v3032_v43  ;;  %v3035_v45 = vld [vmem:[#allocation7 + $0xf8] sm:$0xff]  }
  0x8f   :  { %2290 = vmatprep.subr.bf16.mxu1 %v2919_v46 }
  0x91   :  { %2269 = vmatpush3.bf16.msra.mxu0 %v2594_v47  ;;  %v3038_v47 = vld [vmem:[#allocation7 + $0x178] sm:$0xff]  }
  0x92   :  { %2291 = vmatpush3.bf16.msra.mxu1 %v2922_v48  ;;  %2270 = vmatprep.subr.bf16.mxu0 %v2596_v49  ;;  %3315 = vst [vmem:[#allocation25_spill] sm:$0xff] %v3038_v47  ;;  %v86_v49 = vunpack.c.l.bf16 %v2935_v55 }
  0x93   :  { %2292 = vmatprep.subr.bf16.mxu1 %v2925_v50 }
  0x94   :  { %v3048_v56 = vsub.f32 %v2931_v54, %v86_v49  ;;  %v3065_v54 = vld [vmem:[#allocation7 + $0x1c8] sm:$0xff]  }
  0x95   :  { %2271 = vmatpush3.bf16.msra.mxu0 %v2598_v51  ;;  %v3042_v51 = vld [vmem:[#allocation7 + $0xb8] sm:$0xff]   ;;  %v3068_v49 = vld [vmem:[#allocation7 + $0x248] sm:$0xff]  }
  0x96   :  { %2293 = vmatpush3.bf16.msra.mxu1 %v2929_v53  ;;  %2300 = vmatprep.subr.bf16.mxu0 %v2947_v59  ;;  %3317 = vst [vmem:[#allocation27_spill] sm:$0xff] %v3048_v56  ;;  %3320 = vst [vmem:[#allocation30_spill] sm:$0xff] %v3068_v49  ;;  %v3072_v56 = vld [vmem:[#allocation7 + $0x188] sm:$0xff]  }
  0x97   :  { %2322 = vmatprep.subr.bf16.mxu1 %v2950_v60 }
  0x98   :  { %1100 = vmatmul.mubr.bf16.vlgmr.msra.gmra.mrb[8].mxu0 %v2945_v58 }
  0x99   :  { %1620 = vmatmul.mubr.bf16.vlgmr.msra.gmra.mrb[8].mxu1 %v2842_v37  ;;  %2301 = vmatpush3.bf16.msra.mxu0 %v2954_v61 }
  0x9a   :  { %1659 = vmatprep.mubr.bf16.mxu0 %v2840_v36  ;;  %2323 = vmatpush3.bf16.msra.mxu1 %v2958_v62 }
  0x9b   :  { %1699 = vmatprep.mubr.bf16.mxu1 %v2857_v11  ;;  %2302 = vmatprep.subr.bf16.mxu0 %v2961_v63  ;;  %v2996_v11 = vld [vmem:[#allocation7 + $0x118] sm:$0xff]  }
  0x9c   :  { %2324 = vmatprep.subr.bf16.mxu1 %v2965_v0  ;;  %3308 = vst [vmem:[#allocation18_spill] sm:$0xff] %v2996_v11 }
  0x9d   :  { %2303 = vmatpush3.bf16.msra.mxu0 %v2969_v1 }
  0x9e   :  { %2325 = vmatpush3.bf16.msra.mxu1 %v2972_v2  ;;  %2304 = vmatprep.subr.bf16.mxu0 %v2975_v3 }
  0x9f   :  { %2326 = vmatprep.subr.bf16.mxu1 %v2978_v4 }
  0xa1   :  { %2305 = vmatpush3.bf16.msra.mxu0 %v2981_v5 }
  0xa2   :  { %2327 = vmatpush3.bf16.msra.mxu1 %v2984_v6  ;;  %2306 = vmatprep.subr.bf16.mxu0 %v2987_v7 }
  0xa3   :  { %2328 = vmatprep.subr.bf16.mxu1 %v2990_v8 }
  0xa5   :  { %2307 = vmatpush3.bf16.msra.mxu0 %v2993_v10 }
  0xa6   :  { %2329 = vmatpush3.bf16.msra.mxu1 %v2996_v11  ;;  %2308 = vmatprep.subr.bf16.mxu0 %v2999_v15 }
  0xa7   :  { %2330 = vmatprep.subr.bf16.mxu1 %v3002_v20  ;;  %v3118_v20 = vld [vmem:[#allocation7 + $0x268] sm:$0xff]  }
  0xa8   :  { %3332 = vst [vmem:[#allocation42_spill] sm:$0xff] %v3118_v20 }
  0xa9   :  { %2309 = vmatpush3.bf16.msra.mxu0 %v3005_v22 }
  0xaa   :  { %2331 = vmatpush3.bf16.msra.mxu1 %v3008_v24  ;;  %2310 = vmatprep.subr.bf16.mxu0 %v3011_v26  ;;  %v3112_v24 = vld [vmem:[#allocation7 + $0x220] sm:$0xff]  }
  0xab   :  { %2332 = vmatprep.subr.bf16.mxu1 %v3014_v28  ;;  %v3106_v28 = vld [vmem:[#allocation7 + $0x260] sm:$0xff]   ;;  %3330 = vst [vmem:[#allocation40_spill] sm:$0xff] %v3112_v24 }
  0xac   :  { %3328 = vst [vmem:[#allocation38_spill] sm:$0xff] %v3106_v28 }
  0xad   :  { %2311 = vmatpush3.bf16.msra.mxu0 %v3017_v30 }
  0xae   :  { %2333 = vmatpush3.bf16.msra.mxu1 %v3020_v32  ;;  %2312 = vmatprep.subr.bf16.mxu0 %v3023_v34  ;;  %v3088_v32 = vld [vmem:[#allocation7 + $0x210] sm:$0xff]  }
  0xaf   :  { %2334 = vmatprep.subr.bf16.mxu1 %v3026_v38  ;;  %v3085_v38 = vld [vmem:[#allocation7 + $0x190] sm:$0xff]   ;;  %3323 = vst [vmem:[#allocation33_spill] sm:$0xff] %v3088_v32 }
  0xb1   :  { %2313 = vmatpush3.bf16.msra.mxu0 %v3029_v41 }
  0xb2   :  { %2335 = vmatpush3.bf16.msra.mxu1 %v3032_v43  ;;  %2314 = vmatprep.subr.bf16.mxu0 %v3035_v45  ;;  %v3054_v43 = vld [vmem:[#allocation7 + $0x240] sm:$0xff]  }
  0xb3   :  { %2336 = vmatprep.subr.bf16.mxu1 %v3038_v47  ;;  %3318 = vst [vmem:[#allocation28_spill] sm:$0xff] %v3054_v43  ;;  %v3061_v47 = vld [vmem:[#allocation7 + $0x200] sm:$0xff]  }
  0xb4   :  { %3319 = vst [vmem:[#allocation29_spill] sm:$0xff] %v3061_v47 }
  0xb5   :  { %2315 = vmatpush3.bf16.msra.mxu0 %v3042_v51 }
  0xb6   :  { %2337 = vmatpush3.bf16.msra.mxu1 %v3045_v52  ;;  %2344 = vmatprep.subr.bf16.mxu0 %v3051_v18  ;;  %v3079_v52 = vld [vmem:[#allocation7 + $0x1d0] sm:$0xff]  }
  0xb7   :  { %2366 = vmatprep.subr.bf16.mxu1 %v3054_v43  ;;  %v3076_v43 = vld [vmem:[#allocation7 + $0x208] sm:$0xff]  }
  0xb8   :  { %1660 = vmatmul.mubr.bf16.vlgmr.msra.gmra.mrb[12].mxu0 %v2844_v39  ;;  %3321 = vst [vmem:[#allocation31_spill] sm:$0xff] %v3076_v43 }
  0xb9   :  { %1700 = vmatmul.mubr.bf16.vlgmr.msra.gmra.mrb[12].mxu1 %v2861_v12  ;;  %2345 = vmatpush3.bf16.msra.mxu0 %v3057_v9  ;;  %v3100_v12 = vld [vmem:[#allocation7 + $0x218] sm:$0xff]  }
  0xba   :  { %2367 = vmatpush3.bf16.msra.mxu1 %v3061_v47  ;;  %1739 = vmatprep.mubr.bf16.mxu0 %v2867_v14  ;;  %v3082_v47 = vld [vmem:[#allocation7 + $0x250] sm:$0xff]   ;;  %3326 = vst [vmem:[#allocation36_spill] sm:$0xff] %v3100_v12 }
  0xbb   :  { %2346 = vmatprep.subr.bf16.mxu0 %v3065_v54  ;;  %1779 = vmatprep.mubr.bf16.mxu1 %v2935_v55  ;;  %3322 = vst [vmem:[#allocation32_spill] sm:$0xff] %v3082_v47  ;;  %v3091_v55 = vld [vmem:[#allocation7 + $0x1d8] sm:$0xff]  }
  0xbc   :  { %2368 = vmatprep.subr.bf16.mxu1 %v3068_v49  ;;  %v3094_v49 = vld [vmem:[#allocation7 + $0x258] sm:$0xff]  }
  0xbd   :  { %2347 = vmatpush3.bf16.msra.mxu0 %v3072_v56  ;;  %3324 = vst [vmem:[#allocation34_spill] sm:$0xff] %v3094_v49 }
  0xbe   :  { %2369 = vmatpush3.bf16.msra.mxu1 %v3076_v43  ;;  %2348 = vmatprep.subr.bf16.mxu0 %v3079_v52  ;;  %v3097_v43 = vld [vmem:[#allocation7 + $0x198] sm:$0xff]  }
  0xbf   :  { %2370 = vmatprep.subr.bf16.mxu1 %v3082_v47  ;;  %3325 = vst [vmem:[#allocation35_spill] sm:$0xff] %v3097_v43  ;;  %v3103_v47 = vld [vmem:[#allocation7 + $0x1e0] sm:$0xff]  }
  0xc0   :  { %3327 = vst [vmem:[#allocation37_spill] sm:$0xff] %v3103_v47 }
  0xc1   :  { %2349 = vmatpush3.bf16.msra.mxu0 %v3085_v38 }
  0xc2   :  { %2371 = vmatpush3.bf16.msra.mxu1 %v3088_v32  ;;  %2350 = vmatprep.subr.bf16.mxu0 %v3091_v55  ;;  %v3109_v32 = vld [vmem:[#allocation7 + $0x1a0] sm:$0xff]  }
  0xc3   :  { %2372 = vmatprep.subr.bf16.mxu1 %v3094_v49  ;;  %3329 = vst [vmem:[#allocation39_spill] sm:$0xff] %v3109_v32  ;;  %v3115_v49 = vld [vmem:[#allocation7 + $0x1e8] sm:$0xff]  }
  0xc4   :  { %3331 = vst [vmem:[#allocation41_spill] sm:$0xff] %v3115_v49 }
  0xc5   :  { %2351 = vmatpush3.bf16.msra.mxu0 %v3097_v43  ;;  %v3140_v43 = vld [vmem:[#allocation7 + $0x1f8] sm:$0xff]  }
  0xc6   :  { %2373 = vmatpush3.bf16.msra.mxu1 %v3100_v12  ;;  %2352 = vmatprep.subr.bf16.mxu0 %v3103_v47  ;;  %v3121_v12 = vld [vmem:[#allocation7 + $0x1a8] sm:$0xff]  }
  0xc7   :  { %2374 = vmatprep.subr.bf16.mxu1 %v3106_v28  ;;  %3333 = vst [vmem:[#allocation43_spill] sm:$0xff] %v3121_v12  ;;  %v3124_v47 = vld [vmem:[#allocation7 + $0x228] sm:$0xff]   ;;  %v3127_v28 = vld [vmem:[#allocation7 + $0x1f0] sm:$0xff]  }
  0xc8   :  { %3334 = vst [vmem:[#allocation44_spill] sm:$0xff] %v3124_v47  ;;  %3335 = vst [vmem:[#allocation45_spill] sm:$0xff] %v3127_v28 }
  0xc9   :  { %2353 = vmatpush3.bf16.msra.mxu0 %v3109_v32  ;;  %v3130_v32 = vld [vmem:[#allocation7 + $0x270] sm:$0xff]  }
  0xca   :  { %2375 = vmatpush3.bf16.msra.mxu1 %v3112_v24  ;;  %2354 = vmatprep.subr.bf16.mxu0 %v3115_v49  ;;  %3336 = vst [vmem:[#allocation46_spill] sm:$0xff] %v3130_v32  ;;  %v3133_v24 = vld [vmem:[#allocation7 + $0x1b0] sm:$0xff]  }
  0xcb   :  { %2376 = vmatprep.subr.bf16.mxu1 %v3118_v20  ;;  %v3136_v49 = vld [vmem:[#allocation7 + $0x230] sm:$0xff]   ;;  %v80_v20 = vunpack.c.l.bf16 %v2840_v36  ;;  %v98_v36 = vpack.c.bf16 %v2870_v16, %v2870_v16  ;;  %v77_v16 = vunpack.c.l.bf16 %v2842_v37 }
  0xcc   :  { %3337 = vst [vmem:[#allocation47_spill] sm:$0xff] %v3136_v49 }
  0xcd   :  { %2355 = vmatpush3.bf16.msra.mxu0 %v3121_v12  ;;  %v3143_v12 = vld [vmem:[#allocation7 + $0x278] sm:$0xff]  }
  0xce   :  { %2377 = vmatpush3.bf16.msra.mxu1 %v3124_v47  ;;  %2356 = vmatprep.subr.bf16.mxu0 %v3127_v28  ;;  %v3146_v47 = vld [vmem:[#allocation7 + $0x1b8] sm:$0xff]  }
  0xcf   :  { %2378 = vmatprep.subr.bf16.mxu1 %v3130_v32  ;;  %v3149_v28 = vld [vmem:[#allocation7 + $0x238] sm:$0xff]   ;;  %v2664_v32 = vld [vmem:[#allocation4 + $0x18] sm:$0xff] }
  0xd0   :  { %v90_v11 = vsub.f32 %v2664_v32, %v80_v20  ;;  %v3362_v20 = vld [vmem:[#allocation33_spill] sm:$0xff] }
  0xd1   :  { %2357 = vmatpush3.bf16.msra.mxu0 %v3133_v24 }
  0xd2   :  { %2379 = vmatpush3.bf16.msra.mxu1 %v3136_v49  ;;  %2358 = vmatprep.subr.bf16.mxu0 %v3140_v43  ;;  %v100_v49 = vpack.c.bf16 %v90_v11, %v90_v11  ;;  %v3360_v11 = vld [vmem:[#allocation31_spill] sm:$0xff] }
  0xd3   :  { %2380 = vmatprep.subr.bf16.mxu1 %v3143_v12 }
  0xd5   :  { %2359 = vmatpush3.bf16.msra.mxu0 %v3146_v47 }
  0xd6   :  { %2381 = vmatpush3.bf16.msra.mxu1 %v3149_v28  ;;  %2388 = vmatprep.subr.bf16.mxu0 %v2873_v17  ;;  %v79_v17 = vunpack.c.l.bf16 %v2844_v39 }
  0xd7   :  { %2410 = vmatprep.subr.bf16.mxu1 %v2947_v59  ;;  %v3349_v59 = vld [vmem:[#allocation23_spill] sm:$0xff] }
  0xd8   :  { %1740 = vmatmul.mubr.bf16.vlgmr.msra.gmra.mrb[16].mxu0 %v2881_v19 }
  0xd9   :  { %1780 = vmatmul.mubr.bf16.vlgmr.msra.gmra.mrb[16].mxu1 %v2945_v58  ;;  %2389 = vmatpush3.bf16.msra.mxu0 %v2884_v21  ;;  %v2665_v21 = vld [vmem:[#allocation4] sm:$0xff] }
  0xda   :  { %2411 = vmatpush3.bf16.msra.mxu1 %v2954_v61  ;;  %2390 = vmatprep.subr.bf16.mxu0 %v2888_v23  ;;  %v87_v23 = vsub.f32 %v2665_v21, %v77_v16  ;;  %v3351_v61 = vld [vmem:[#allocation14_spill] sm:$0xff]  ;;  %v3368_v16 = vld [vmem:[#allocation44_spill] sm:$0xff]  ;;  %v3370_v21 = vld [vmem:[#allocation17_spill] sm:$0xff] }
  0xdb   :  { %2412 = vmatprep.subr.bf16.mxu1 %v2961_v63  ;;  %1819 = vmatprep.mubr.bf16.mxu0 %v98_v36  ;;  %v3352_v63 = vld [vmem:[#allocation24_spill] sm:$0xff]  ;;  %v85_v36 = vunpack.c.l.bf16 %v2945_v58 }
  0xdc   :  { %1859 = vmatprep.mubr.bf16.mxu1 %v100_v49  ;;  %v97_v37 = vpack.c.bf16 %v87_v23, %v87_v23 }
  0xdd   :  { %2391 = vmatpush3.bf16.msra.mxu0 %v2892_v25  ;;  %v84_v25 = vunpack.c.l.bf16 %v2867_v14  ;;  %v102_v14 = vpack.c.bf16 %v2940_v57, %v2940_v57  ;;  %v3348_v57 = vld [vmem:[#allocation43_spill] sm:$0xff]  ;;  %v95_v23 = vsub.f32 %v3370_v21, %v85_v36 }
  0xde   :  { %2413 = vmatpush3.bf16.msra.mxu1 %v2969_v1  ;;  %2392 = vmatprep.subr.bf16.mxu0 %v2895_v27  ;;  %v2666_v27 = vld [vmem:[#allocation4 + $0x10] sm:$0xff] }
  0xdf   :  { %2414 = vmatprep.subr.bf16.mxu1 %v2975_v3  ;;  %v94_v39 = vsub.f32 %v2863_v13, %v84_v25  ;;  %v3339_v13 = vld [vmem:[#allocation35_spill] sm:$0xff] }
  0xe0   :  { %v3371_v25 = vld [vmem:[#allocation47_spill] sm:$0xff] }
  0xe1   :  { %2393 = vmatpush3.bf16.msra.mxu0 %v2898_v29  ;;  %v89_v29 = vsub.f32 %v2666_v27, %v79_v17  ;;  %v3369_v17 = vld [vmem:[#allocation46_spill] sm:$0xff]  ;;  %v105_v27 = vpack.c.bf16 %v95_v23, %v95_v23 }
  0xe2   :  { %2415 = vmatpush3.bf16.msra.mxu1 %v2981_v5  ;;  %2394 = vmatprep.subr.bf16.mxu0 %v2901_v31  ;;  %v3356_v5 = vld [vmem:[#allocation28_spill] sm:$0xff] }
  0xe3   :  { %2416 = vmatprep.subr.bf16.mxu1 %v2987_v7  ;;  %v99_v31 = vpack.c.bf16 %v89_v29, %v89_v29 }
  0xe5   :  { %2395 = vmatpush3.bf16.msra.mxu0 %v2904_v33  ;;  %v104_v33 = vpack.c.bf16 %v94_v39, %v94_v39 }
  0xe6   :  { %2417 = vmatpush3.bf16.msra.mxu1 %v2993_v10  ;;  %2396 = vmatprep.subr.bf16.mxu0 %v2907_v35  ;;  %v3341_v35 = vld [vmem:[#allocation37_spill] sm:$0xff]  ;;  %v3359_v10 = vld [vmem:[#allocation30_spill] sm:$0xff] }
  0xe7   :  { %2418 = vmatprep.subr.bf16.mxu1 %v2999_v15  ;;  %v3361_v15 = vld [vmem:[#allocation32_spill] sm:$0xff] }
  0xe9   :  { %2397 = vmatpush3.bf16.msra.mxu0 %v2910_v40  ;;  %v3342_v40 = vld [vmem:[#allocation20_spill] sm:$0xff] }
  0xea   :  { %2419 = vmatpush3.bf16.msra.mxu1 %v3005_v22  ;;  %2398 = vmatprep.subr.bf16.mxu0 %v2913_v42  ;;  %v3343_v42 = vld [vmem:[#allocation39_spill] sm:$0xff]  ;;  %v3363_v22 = vld [vmem:[#allocation34_spill] sm:$0xff] }
  0xeb   :  { %2420 = vmatprep.subr.bf16.mxu1 %v3011_v26  ;;  %v3365_v26 = vld [vmem:[#allocation38_spill] sm:$0xff] }
  0xed   :  { %2399 = vmatpush3.bf16.msra.mxu0 %v2916_v44  ;;  %v3344_v44 = vld [vmem:[#allocation21_spill] sm:$0xff] }
  0xee   :  { %2421 = vmatpush3.bf16.msra.mxu1 %v3017_v30  ;;  %2400 = vmatprep.subr.bf16.mxu0 %v2919_v46  ;;  %v3345_v46 = vld [vmem:[#allocation41_spill] sm:$0xff] }
  0xef   :  { %2422 = vmatprep.subr.bf16.mxu1 %v3023_v34  ;;  %v3366_v34 = vld [vmem:[#allocation40_spill] sm:$0xff] }
  0xf1   :  { %2401 = vmatpush3.bf16.msra.mxu0 %v2922_v48  ;;  %v3346_v48 = vld [vmem:[#allocation15_spill] sm:$0xff] }
  0xf2   :  { %2423 = vmatpush3.bf16.msra.mxu1 %v3029_v41  ;;  %2402 = vmatprep.subr.bf16.mxu0 %v2925_v50  ;;  %v81_v50 = vunpack.c.l.bf16 %v3346_v48 }
  0xf3   :  { %2424 = vmatprep.subr.bf16.mxu1 %v3035_v45 }
  0xf5   :  { %2403 = vmatpush3.bf16.msra.mxu0 %v2929_v53  ;;  %v3347_v53 = vld [vmem:[#allocation22_spill] sm:$0xff] }
  0xf6   :  { %2425 = vmatpush3.bf16.msra.mxu1 %v3042_v51  ;;  %2432 = vmatprep.subr.bf16.mxu0 %v2950_v60  ;;  %v3350_v60 = vld [vmem:[#allocation45_spill] sm:$0xff] }
  0xf7   :  { %2454 = vmatprep.subr.bf16.mxu1 %v3051_v18  ;;  %v3340_v18 = vld [vmem:[#allocation19_spill] sm:$0xff] }
  0xf8   :  { %1820 = vmatmul.mubr.bf16.vlgmr.msra.gmra.mrb[20].mxu0 %v97_v37 }
  0xf9   :  { %1860 = vmatmul.mubr.bf16.vlgmr.msra.gmra.mrb[20].mxu1 %v99_v31  ;;  %2433 = vmatpush3.bf16.msra.mxu0 %v2958_v62  ;;  %v91_v62 = vsub.f32 %v3351_v61, %v81_v50 }
  0xfa   :  { %2455 = vmatpush3.bf16.msra.mxu1 %v3057_v9  ;;  %2434 = vmatprep.subr.bf16.mxu0 %v2965_v0  ;;  %v3338_v9 = vld [vmem:[#allocation18_spill] sm:$0xff]  ;;  %v3353_v0 = vld [vmem:[#allocation16_spill] sm:$0xff] }
  0xfb   :  { %2456 = vmatprep.subr.bf16.mxu1 %v3065_v54  ;;  %1899 = vmatprep.mubr.bf16.mxu0 %v102_v14  ;;  %v101_v3 = vpack.c.bf16 %v91_v62, %v91_v62 }
  0xfc   :  { %1939 = vmatprep.mubr.bf16.mxu1 %v104_v33 }
  0xfd   :  { %2435 = vmatpush3.bf16.msra.mxu0 %v2972_v2  ;;  %v3354_v2 = vld [vmem:[#allocation25_spill] sm:$0xff] }
  0xfe   :  { %2457 = vmatpush3.bf16.msra.mxu1 %v3072_v56  ;;  %2436 = vmatprep.subr.bf16.mxu0 %v2978_v4  ;;  %v83_v56 = vunpack.c.l.bf16 %v2881_v19  ;;  %v3355_v19 = vld [vmem:[#allocation26_spill] sm:$0xff] }
  0xff   :  { %2458 = vmatprep.subr.bf16.mxu1 %v3079_v52 }
 0x100   :  { %v93_v1 = vsub.f32 %v3353_v0, %v83_v56 }
 0x101   :  { %2437 = vmatpush3.bf16.msra.mxu0 %v2984_v6  ;;  %v3357_v6 = vld [vmem:[#allocation27_spill] sm:$0xff] }
 0x102   :  { %2459 = vmatpush3.bf16.msra.mxu1 %v3085_v38  ;;  %2438 = vmatprep.subr.bf16.mxu0 %v2990_v8  ;;  %v103_v4 = vpack.c.bf16 %v93_v1, %v93_v1  ;;  %v106_v7 = vpack.c.bf16 %v3357_v6, %v3357_v6  ;;  %v3358_v8 = vld [vmem:[#allocation29_spill] sm:$0xff] }
 0x103   :  { %2460 = vmatprep.subr.bf16.mxu1 %v3091_v55 }
 0x105   :  { %2439 = vmatpush3.bf16.msra.mxu0 %v3338_v9 }
 0x106   :  { %2461 = vmatpush3.bf16.msra.mxu1 %v3339_v13  ;;  %2440 = vmatprep.subr.bf16.mxu0 %v3340_v18 }
 0x107   :  { %2462 = vmatprep.subr.bf16.mxu1 %v3341_v35 }
 0x109   :  { %2441 = vmatpush3.bf16.msra.mxu0 %v3342_v40 }
 0x10a   :  { %2463 = vmatpush3.bf16.msra.mxu1 %v3343_v42  ;;  %2442 = vmatprep.subr.bf16.mxu0 %v3344_v44 }
 0x10b   :  { %2464 = vmatprep.subr.bf16.mxu1 %v3345_v46 }
 0x10d   :  { %2443 = vmatpush3.bf16.msra.mxu0 %v3347_v53 }
 0x10e   :  { %2465 = vmatpush3.bf16.msra.mxu1 %v3348_v57  ;;  %2444 = vmatprep.subr.bf16.mxu0 %v3349_v59 }
 0x10f   :  { %2466 = vmatprep.subr.bf16.mxu1 %v3350_v60 }
 0x111   :  { %2445 = vmatpush3.bf16.msra.mxu0 %v3352_v63 }
 0x112   :  { %2467 = vmatpush3.bf16.msra.mxu1 %v3133_v24  ;;  %2446 = vmatprep.subr.bf16.mxu0 %v3354_v2  ;;  %v3364_v24 = vld [vmem:[#allocation36_spill] sm:$0xff] }
 0x113   :  { %2468 = vmatprep.subr.bf16.mxu1 %v3140_v43 }
 0x115   :  { %2447 = vmatpush3.bf16.msra.mxu0 %v3355_v19 }
 0x116   :  { %2469 = vmatpush3.bf16.msra.mxu1 %v3146_v47  ;;  %2476 = vmatprep.subr.bf16.mxu0 %v3356_v5  ;;  %v3367_v47 = vld [vmem:[#allocation42_spill] sm:$0xff] }
 0x118   :  { %1900 = vmatmul.mubr.bf16.vlgmr.msra.gmra.mrb[24].mxu0 %v101_v3 }
 0x119   :  { %2477 = vmatpush3.bf16.msra.mxu0 %v3358_v8  ;;  %1940 = vmatmul.mubr.bf16.vlgmr.msra.gmra.mrb[24].mxu1 %v103_v4 }
 0x11a   :  { %2478 = vmatprep.subr.bf16.mxu0 %v3359_v10  ;;  %1979 = vmatprep.mubr.bf16.mxu0 %v106_v7 }
 0x11d   :  { %2479 = vmatpush3.bf16.msra.mxu0 %v3360_v11 }
 0x11e   :  { %2480 = vmatprep.subr.bf16.mxu0 %v3361_v15 }
 0x121   :  { %2481 = vmatpush3.bf16.msra.mxu0 %v3362_v20 }
 0x122   :  { %2482 = vmatprep.subr.bf16.mxu0 %v3363_v22 }
 0x125   :  { %2483 = vmatpush3.bf16.msra.mxu0 %v3364_v24 }
 0x126   :  { %2484 = vmatprep.subr.bf16.mxu0 %v3365_v26 }
 0x129   :  { %2485 = vmatpush3.bf16.msra.mxu0 %v3366_v34 }
 0x12a   :  { %2486 = vmatprep.subr.bf16.mxu0 %v3367_v47 }
 0x12b   :  { %v2184_v30 = vpop.f32.mrb[0].mxu0 }
 0x12c   :  { %v2206_v32 = vpop.f32.mrb[0].mxu1  ;;  %v2185_v38 = vpop.f32.mrb[1].mxu0 }
 0x12d   :  { %v2207_v41 = vpop.f32.mrb[1].mxu1  ;;  %v2186_v43 = vadd.f32 %v2185_v38, %v2184_v30  ;;  %v2187_v51 = vpop.f32.mrb[2].mxu0  ;;  %2487 = vmatpush3.bf16.msra.mxu0 %v3368_v16 }
 0x12e   :  { %v2208_v45 = vadd.f32 %v2207_v41, %v2206_v32  ;;  %v2209_v52 = vpop.f32.mrb[2].mxu1  ;;  %v2188_v54 = vpop.f32.mrb[3].mxu0  ;;  %2488 = vmatprep.subr.bf16.mxu0 %v3369_v17 }
 0x12f   :  { %v2210_v49 = vpop.f32.mrb[3].mxu1 }
 0x130   :  { %v982_v55 = vadd.f32 %v2208_v45, %v2186_v43 }
 0x131   :  { %2489 = vmatpush3.bf16.msra.mxu0 %v3371_v25 }
 0x132   :  { %2490 = vmatprep.subr.bf16.mxu0 %v3143_v12 }
 0x135   :  { %2491 = vmatpush3.bf16.msra.mxu0 %v3149_v28 }
 0x138   :  { %1980 = vmatmul.mubr.bf16.vlgmr.msra.gmra.mrb[28].mxu0 %v105_v27 }
 0x14b   :  { %v2228_v29 = vpop.f32.mrb[4].mxu0 }
 0x14c   :  { %v2229_v37 = vpop.f32.mrb[5].mxu0  ;;  %v2250_v14 = vpop.f32.mrb[4].mxu1 }
 0x14d   :  { %v2230_v39 = vadd.f32 %v2229_v37, %v2228_v29  ;;  %v2231_v31 = vpop.f32.mrb[6].mxu0  ;;  %v2251_v33 = vpop.f32.mrb[5].mxu1 }
 0x14e   :  { %v2232_v58 = vpop.f32.mrb[7].mxu0  ;;  %v2252_v13 = vadd.f32 %v2251_v33, %v2250_v14  ;;  %v2253_v18 = vpop.f32.mrb[6].mxu1 }
 0x14f   :  { %v1022_v9 = vadd.f32 %v2230_v39, %v982_v55  ;;  %v2254_v35 = vpop.f32.mrb[7].mxu1 }
 0x151   :  { %v1062_v40 = vadd.f32 %v2252_v13, %v1022_v9 }
 0x16b   :  { %v2272_v42 = vpop.f32.mrb[8].mxu0 }
 0x16c   :  { %v2273_v44 = vpop.f32.mrb[9].mxu0  ;;  %v2294_v46 = vpop.f32.mrb[8].mxu1 }
 0x16d   :  { %v2274_v12 = vadd.f32 %v2273_v44, %v2272_v42  ;;  %v2275_v48 = vpop.f32.mrb[10].mxu0  ;;  %v2295_v50 = vpop.f32.mrb[9].mxu1  ;;  %v1989_v44 = vstv %s3266_s0 }
 0x16e   :  { %v2276_v28 = vpop.f32.mrb[11].mxu0  ;;  %v2296_v53 = vadd.f32 %v2295_v50, %v2294_v46  ;;  %v2297_v56 = vpop.f32.mrb[10].mxu1 }
 0x16f   :  { %v1102_v57 = vadd.f32 %v2274_v12, %v1062_v40  ;;  %v2298_v59 = vpop.f32.mrb[11].mxu1 }
 0x171   :  { %v1622_v60 = vadd.f32 %v2296_v53, %v1102_v57 }
 0x18b   :  { %v2316_v61 = vpop.f32.mrb[12].mxu0 }
 0x18c   :  { %v2317_v62 = vpop.f32.mrb[13].mxu0  ;;  %v2338_v63 = vpop.f32.mrb[12].mxu1 }
 0x18d   :  { %v2318_v0 = vadd.f32 %v2317_v62, %v2316_v61  ;;  %v2319_v1 = vpop.f32.mrb[14].mxu0  ;;  %v2339_v2 = vpop.f32.mrb[13].mxu1 }
 0x18e   :  { %v2320_v3 = vpop.f32.mrb[15].mxu0  ;;  %v2340_v19 = vadd.f32 %v2339_v2, %v2338_v63  ;;  %v2341_v4 = vpop.f32.mrb[14].mxu1 }
 0x18f   :  { %v1662_v5 = vadd.f32 %v2318_v0, %v1622_v60  ;;  %v2342_v6 = vpop.f32.mrb[15].mxu1 }
 0x191   :  { %v1702_v7 = vadd.f32 %v2340_v19, %v1662_v5 }
 0x1ab   :  { %v2360_v8 = vpop.f32.mrb[16].mxu0 }
 0x1ac   :  { %v2361_v10 = vpop.f32.mrb[17].mxu0  ;;  %v2382_v11 = vpop.f32.mrb[16].mxu1 }
 0x1ad   :  { %v2362_v15 = vadd.f32 %v2361_v10, %v2360_v8  ;;  %v2363_v20 = vpop.f32.mrb[18].mxu0  ;;  %v2383_v22 = vpop.f32.mrb[17].mxu1 }
 0x1ae   :  { %v2364_v24 = vpop.f32.mrb[19].mxu0  ;;  %v2384_v26 = vadd.f32 %v2383_v22, %v2382_v11  ;;  %v2385_v30 = vpop.f32.mrb[18].mxu1 }
 0x1af   :  { %v1742_v32 = vadd.f32 %v2362_v15, %v1702_v7  ;;  %v2386_v34 = vpop.f32.mrb[19].mxu1 }
 0x1b1   :  { %v1782_v38 = vadd.f32 %v2384_v26, %v1742_v32 }
 0x1cb   :  { %v2404_v41 = vpop.f32.mrb[20].mxu0 }
 0x1cc   :  { %v2426_v43 = vpop.f32.mrb[20].mxu1  ;;  %v2405_v45 = vpop.f32.mrb[21].mxu0 }
 0x1cd   :  { %v2406_v47 = vadd.f32 %v2405_v45, %v2404_v41  ;;  %v2427_v51 = vpop.f32.mrb[21].mxu1  ;;  %v2407_v52 = vpop.f32.mrb[22].mxu0 }
 0x1ce   :  { %v2428_v54 = vadd.f32 %v2427_v51, %v2426_v43  ;;  %v2408_v49 = vpop.f32.mrb[23].mxu0  ;;  %v2429_v55 = vpop.f32.mrb[22].mxu1 }
 0x1cf   :  { %v2430_v36 = vpop.f32.mrb[23].mxu1 }
 0x1d0   :  { %v1862_v16 = vadd.f32 %v2428_v54, %v2406_v47 }
 0x1eb   :  { %v2448_v17 = vpop.f32.mrb[24].mxu0 }
 0x1ec   :  { %v2449_v21 = vpop.f32.mrb[25].mxu0  ;;  %v2470_v23 = vpop.f32.mrb[24].mxu1 }
 0x1ed   :  { %v2450_v25 = vadd.f32 %v2449_v21, %v2448_v17  ;;  %v2451_v27 = vpop.f32.mrb[26].mxu0  ;;  %v2471_v29 = vpop.f32.mrb[25].mxu1 }
 0x1ee   :  { %v2452_v37 = vpop.f32.mrb[27].mxu0  ;;  %v2472_v39 = vadd.f32 %v2471_v29, %v2470_v23  ;;  %v2473_v31 = vpop.f32.mrb[26].mxu1 }
 0x1ef   :  { %v1902_v14 = vadd.f32 %v2450_v25, %v1862_v16  ;;  %v2474_v58 = vpop.f32.mrb[27].mxu1 }
 0x1f1   :  { %v1942_v33 = vadd.f32 %v2472_v39, %v1902_v14 }
 0x20b   :  { %v2492_v9 = vpop.f32.mrb[28].mxu0 }
 0x20c   :  { %v2493_v13 = vpop.f32.mrb[29].mxu0 }
 0x20d   :  { %v2494_v18 = vadd.f32 %v2493_v13, %v2492_v9  ;;  %v2495_v35 = vpop.f32.mrb[30].mxu0 }
 0x20e   :  { %v2496_v40 = vpop.f32.mrb[31].mxu0 }
 0x20f   :  { %v1982_v42 = vadd.f32 %v2494_v18, %v1942_v33 }
 0x211   :  { %v1987_v46 = vadd.f32 %v1982_v42, %v1782_v38 }
 0x213   :  { %v1990_v12 = vadd.f32 %v1989_v44, %v1987_v46 }
 0x215   :  { %1991 = vst [vmem:[#allocation10] sm:$0xff] %v1990_v12 }
 0x216   :  { %2744 = shalt.err (!%p2741_p0)
}
 0x217   :  { %s2745_s5 = scalar_lea.hbm %s3270_s4, 128 }
 0x218   :  { %p2746_p1 = scmp.ne.s32.totalorder %s3270_s4, %s2745_s5  ;;  %p2749_p2 = scmp.lt.u32.totalorder %s2745_s5, %s3270_s4 }
 0x21a   :  { %p2751_p3 = pnand %p2749_p2, %p2746_p1 }
 0x21c   :  { %2754 = shalt.err (!%p2751_p3)
}
 0x21d   :  { %2001 = dma.vmem_to_hbm [thread:$0]  %s1999_s27, 128, %s3270_s4, [#allocation6]  }
 0x21e   :  { %2759 = dma.done.wait [#allocation6], 128  }
 0x21f   :  { %2760 = vsyncadd [#allocation6], 4294967168 }
 0x220   :  { %2005 = vsyncpa [#allocation5], 1 }
 0x221   :  { %2006 = vsyncpa [#allocation8], 1 }
 0x222   :  { %2007 = vsyncpa [#allocation6], 1 }

</bundles_post_ra>
